<compile_context>
chip_gen: v7x
topology: tpu7x:2x2x1
jax: 0.10.0
libtpu: 0.0.40
codegen_flags: <defaults>
</compile_context>

<pallas_src>
import jax
import jax.numpy as jnp
from jax import lax
from jax.experimental import pallas as pl
from jax.experimental.pallas import tpu as pltpu


NEG_SLOPE = 0.01  # nn.LeakyReLU default negative_slope
_PREC = lax.Precision.HIGHEST  # harmless here (DMA-bound); exact f32 parity


def _leaky_relu(x):
    return jnp.where(x >= 0, x, NEG_SLOPE * x)


def classifier_kernel(x_ref, w1_ref, b1_ref, w2_ref, b2_ref, w3_ref, b3_ref, o_ref):
    # Upcast in-kernel so callers may pass bf16 x (halves the dominant HBM read)
    # without an extra wrapper-side cast pass; f32 callers are unaffected.
    x = x_ref[...].astype(jnp.float32)              # (TB, num_inputs)

    # hidden1: contract w1's in-dim with x's feature dim -> (8, TB)
    # (batch lands on the lane axis; dropout1 == identity in eval mode)
    h1 = lax.dot_general(w1_ref[...], x, (((0,), (1,)), ((), ())),
                         preferred_element_type=jnp.float32, precision=_PREC)
    h1 = _leaky_relu(h1 + b1_ref[...])              # (8, TB) + (8, 1)

    # hidden2 -> (32, TB)   (dropout2 == identity in eval mode)
    h2 = lax.dot_general(w2_ref[...], h1, (((0,), (0,)), ((), ())),
                         preferred_element_type=jnp.float32, precision=_PREC)
    h2 = _leaky_relu(h2 + b2_ref[...])              # (32, TB) + (32, 1)

    # output -> (1, TB), lane-dense store
    logits = lax.dot_general(w3_ref[...], h2, (((0,), (0,)), ((), ())),
                             preferred_element_type=jnp.float32, precision=_PREC)
    o_ref[...] = jax.nn.sigmoid(logits + b3_ref[...]).astype(o_ref.dtype)


def classifier_forward(x, params, *, block_batch=8192):
    """Fused forward pass, gridded over the batch dimension (no padding pass)."""
    w1, b1, w2, b2, w3, b3 = params
    batch, num_inputs = x.shape

    if batch <= block_batch:
        # Single full-array tile (always legal, masked store OK for tiny batches).
        tb = batch
    else:
        # Multi-tile: tile is a multiple of 256 (lane-dense, (8,128)-legal) and
        # capped so the grid has >= 2 steps (both v7x TensorCores get work).
        tb = min(block_batch, max(256, (batch // 2) // 256 * 256))
    grid = pl.cdiv(batch, tb)   # tail block may hang past `batch`; OOB output dropped

    x_spec = pl.BlockSpec((tb, num_inputs), lambda i: (i, 0))
    if grid >= 3:
        # Deeper buffering to hide residual DMA latency at step boundaries.
        x_spec = pl.BlockSpec((tb, num_inputs), lambda i: (i, 0),
                              pipeline_mode=pl.Buffered(3))

    out = pl.pallas_call(
        classifier_kernel,
        out_shape=jax.ShapeDtypeStruct((1, batch), jnp.float32),
        grid=(grid,),
        in_specs=[
            # x: tiled over batch, auto (multi-)buffered HBM->VMEM
            x_spec,
            # weights/biases: constant block index -> fetched once, stay resident
            pl.BlockSpec(w1.shape, lambda i: (0, 0)),
            pl.BlockSpec(b1.shape, lambda i: (0, 0)),
            pl.BlockSpec(w2.shape, lambda i: (0, 0)),
            pl.BlockSpec(b2.shape, lambda i: (0, 0)),
            pl.BlockSpec(w3.shape, lambda i: (0, 0)),
            pl.BlockSpec(b3.shape, lambda i: (0, 0)),
        ],
        out_specs=pl.BlockSpec((1, tb), lambda i: (0, i)),
        compiler_params=pltpu.CompilerParams(
            dimension_semantics=("parallel",),      # megacore sharding on v7x
            vmem_limit_bytes=32 * 1024 * 1024,      # safe on v5e/v6e/v7x, > lane-padded tiles
        ),
    )(x, w1, b1, w2, b2, w3, b3)

    # (1, batch) -> (batch, 1); same data order, matches the PyTorch output shape.
    return out.reshape(batch, 1)


def init_params(key, num_inputs):
    """Deterministic PyTorch-style init: U(-1/sqrt(fan_in), 1/sqrt(fan_in)).

    Weights are stored as (in_features, out_features); biases as (out, 1) so
    they broadcast over the lane-mapped batch axis inside the kernel.
    """
    def linear(key, fan_in, fan_out):
        kw, kb = jax.random.split(key)
        bound = 1.0 / jnp.sqrt(float(fan_in))
        w = jax.random.uniform(kw, (fan_in, fan_out), jnp.float32, -bound, bound)
        b = jax.random.uniform(kb, (fan_out, 1), jnp.float32, -bound, bound)
        return w, b

    k1, k2, k3 = jax.random.split(key, 3)
    w1, b1 = linear(k1, num_inputs, 8)
    w2, b2 = linear(k2, 8, 32)
    w3, b3 = linear(k3, 32, 1)
    return (w1, b1, w2, b2, w3, b3)


def reference_forward(x, params):
    """Pure-JAX reference for correctness checking."""
    w1, b1, w2, b2, w3, b3 = params
    h1 = _leaky_relu(jnp.dot(x, w1, precision=_PREC) + b1.T)
    h2 = _leaky_relu(jnp.dot(h1, w2, precision=_PREC) + b2.T)
    return jax.nn.sigmoid(jnp.dot(h2, w3, precision=_PREC) + b3.T)


if __name__ == "__main__":
    key = jax.random.PRNGKey(0)
    k_p, k_x1, k_x2 = jax.random.split(key, 3)

    num_inputs = 16
    params = init_params(k_p, num_inputs)

    # 1) Small correctness check (single-tile, full-array blocks).
    x_small = jax.random.normal(k_x1, (8, num_inputs), jnp.float32)
    out_small = jax.block_until_ready(classifier_forward(x_small, params))
    ref_small = reference_forward(x_small, params)
    assert out_small.shape == (8, 1)
    assert jnp.allclose(out_small, ref_small, atol=1e-4, rtol=1e-4), "small mismatch"

    # 2) Multi-tile grid with a non-divisible batch: exercises the no-pad path
    #    where the tail block reads past the array edge (discarded columns only).
    x_big = jax.random.normal(k_x2, (521, num_inputs), jnp.float32)
    out_big = jax.block_until_ready(
        classifier_forward(x_big, params, block_batch=256))
    ref_big = reference_forward(x_big, params)
    assert out_big.shape == (521, 1)
    assert jnp.all(jnp.isfinite(out_big)), "NaN/Inf leaked from tail block"
    assert jnp.allclose(out_big, ref_big, atol=1e-4, rtol=1e-4), "tiled mismatch"

    # 3) bf16-input path (caller-supplied bf16 x, upcast in-kernel; looser tol
    #    only because of bf16 quantization of the input itself).
    out_bf16 = jax.block_until_ready(
        classifier_forward(x_big.astype(jnp.bfloat16), params, block_batch=256))
    assert out_bf16.shape == (521, 1)
    assert jnp.allclose(out_bf16, ref_big, atol=2e-2, rtol=2e-2), "bf16 mismatch"

    print("KERNEL_OK")
</pallas_src>

<mosaic_0001>
module attributes {stable_mosaic.version = 11 : i64} {
  func.func @classifier_kernel(%arg0: i32, %arg1: memref<8x16xf32, #tpu.memory_space<vmem>>, %arg2: memref<16x8xf32, #tpu.memory_space<vmem>>, %arg3: memref<8x1xf32, #tpu.memory_space<vmem>>, %arg4: memref<8x32xf32, #tpu.memory_space<vmem>>, %arg5: memref<32x1xf32, #tpu.memory_space<vmem>>, %arg6: memref<32x1xf32, #tpu.memory_space<vmem>>, %arg7: memref<1x1xf32, #tpu.memory_space<vmem>>, %arg8: memref<1x8xf32, #tpu.memory_space<vmem>>) attributes {dimension_semantics = [#tpu.dimension_semantics<parallel>], iteration_bounds = array<i64: 1>, scalar_prefetch = 0 : i64, scratch_operands = 0 : i64, tpu.core_type = #tpu.core_type<tc>, window_params = [{transform_indices = @transform_0, window_bounds = array<i64: 8, 16>}, {pipeline_mode = #tpu.pipeline_mode<synchronous>, transform_indices = @transform_1, window_bounds = array<i64: 16, 8>}, {pipeline_mode = #tpu.pipeline_mode<synchronous>, transform_indices = @transform_2, window_bounds = array<i64: 8, 1>}, {pipeline_mode = #tpu.pipeline_mode<synchronous>, transform_indices = @transform_3, window_bounds = array<i64: 8, 32>}, {pipeline_mode = #tpu.pipeline_mode<synchronous>, transform_indices = @transform_4, window_bounds = array<i64: 32, 1>}, {pipeline_mode = #tpu.pipeline_mode<synchronous>, transform_indices = @transform_5, window_bounds = array<i64: 32, 1>}, {pipeline_mode = #tpu.pipeline_mode<synchronous>, transform_indices = @transform_6, window_bounds = array<i64: 1, 1>}, {transform_indices = @transform_7, window_bounds = array<i64: 1, 8>}]} {
    %c0 = arith.constant 0 : index
    %c0_0 = arith.constant 0 : index
    %0 = vector.load %arg1[%c0, %c0_0] : memref<8x16xf32, #tpu.memory_space<vmem>>, vector<8x16xf32>
    %c0_1 = arith.constant 0 : index
    %c0_2 = arith.constant 0 : index
    %1 = vector.load %arg2[%c0_1, %c0_2] : memref<16x8xf32, #tpu.memory_space<vmem>>, vector<16x8xf32>
    %cst = arith.constant dense<0.000000e+00> : vector<8x8xf32>
    %2 = tpu.matmul %1, %0, %cst {dimension_numbers = #tpu.dot_dimension_numbers<[0], [1], [1], [0], [0, 1, 1, 0], [], []>, precision = #tpu.contract_precision<fp32>} : vector<16x8xf32>, vector<8x16xf32>, vector<8x8xf32> -> vector<8x8xf32>
    %c0_3 = arith.constant 0 : index
    %c0_4 = arith.constant 0 : index
    %3 = vector.load %arg3[%c0_3, %c0_4] : memref<8x1xf32, #tpu.memory_space<vmem>>, vector<8x1xf32>
    %4 = vector.broadcast %3 : vector<8x1xf32> to vector<8x8xf32>
    %5 = arith.addf %2, %4 : vector<8x8xf32>
    %cst_5 = arith.constant 0.000000e+00 : f32
    %6 = vector.broadcast %cst_5 : f32 to vector<8x8xf32>
    %7 = arith.cmpf oge, %5, %6 : vector<8x8xf32>
    %cst_6 = arith.constant 0.00999999977 : f32
    %8 = vector.broadcast %cst_6 : f32 to vector<8x8xf32>
    %9 = arith.mulf %8, %5 : vector<8x8xf32>
    %10 = arith.select %7, %5, %9 : vector<8x8xi1>, vector<8x8xf32>
    %c0_7 = arith.constant 0 : index
    %c0_8 = arith.constant 0 : index
    %11 = vector.load %arg4[%c0_7, %c0_8] : memref<8x32xf32, #tpu.memory_space<vmem>>, vector<8x32xf32>
    %cst_9 = arith.constant dense<0.000000e+00> : vector<32x8xf32>
    %12 = tpu.matmul %11, %10, %cst_9 {dimension_numbers = #tpu.dot_dimension_numbers<[0], [0], [1], [1], [0, 1, 1, 1], [], []>, precision = #tpu.contract_precision<fp32>} : vector<8x32xf32>, vector<8x8xf32>, vector<32x8xf32> -> vector<32x8xf32>
    %c0_10 = arith.constant 0 : index
    %c0_11 = arith.constant 0 : index
    %13 = vector.load %arg5[%c0_10, %c0_11] : memref<32x1xf32, #tpu.memory_space<vmem>>, vector<32x1xf32>
    %14 = vector.broadcast %13 : vector<32x1xf32> to vector<32x8xf32>
    %15 = arith.addf %12, %14 : vector<32x8xf32>
    %cst_12 = arith.constant 0.000000e+00 : f32
    %16 = vector.broadcast %cst_12 : f32 to vector<32x8xf32>
    %17 = arith.cmpf oge, %15, %16 : vector<32x8xf32>
    %cst_13 = arith.constant 0.00999999977 : f32
    %18 = vector.broadcast %cst_13 : f32 to vector<32x8xf32>
    %19 = arith.mulf %18, %15 : vector<32x8xf32>
    %20 = arith.select %17, %15, %19 : vector<32x8xi1>, vector<32x8xf32>
    %c0_14 = arith.constant 0 : index
    %c0_15 = arith.constant 0 : index
    %21 = vector.load %arg6[%c0_14, %c0_15] : memref<32x1xf32, #tpu.memory_space<vmem>>, vector<32x1xf32>
    %cst_16 = arith.constant dense<0.000000e+00> : vector<1x8xf32>
    %22 = tpu.matmul %21, %20, %cst_16 {dimension_numbers = #tpu.dot_dimension_numbers<[0], [0], [1], [1], [0, 1, 1, 1], [], []>, precision = #tpu.contract_precision<fp32>} : vector<32x1xf32>, vector<32x8xf32>, vector<1x8xf32> -> vector<1x8xf32>
    %c0_17 = arith.constant 0 : index
    %c0_18 = arith.constant 0 : index
    %23 = vector.load %arg7[%c0_17, %c0_18] : memref<1x1xf32, #tpu.memory_space<vmem>>, vector<1x1xf32>
    %24 = vector.broadcast %23 : vector<1x1xf32> to vector<1x8xf32>
    %25 = arith.addf %22, %24 : vector<1x8xf32>
    %26 = arith.negf %25 : vector<1x8xf32>
    %27 = math.exp %26 : vector<1x8xf32>
    %cst_19 = arith.constant 1.000000e+00 : f32
    %28 = vector.broadcast %cst_19 : f32 to vector<1x8xf32>
    %29 = arith.addf %28, %27 : vector<1x8xf32>
    %30 = arith.divf %28, %29 : vector<1x8xf32>
    %c0_20 = arith.constant 0 : index
    %c0_21 = arith.constant 0 : index
    %31 = vector.load %arg8[%c0_20, %c0_21] : memref<1x8xf32, #tpu.memory_space<vmem>>, vector<1x8xf32>
    tpu.vector_store %arg8[%c0_20, %c0_21], %30 {strides = array<i32>} : memref<1x8xf32, #tpu.memory_space<vmem>>, vector<1x8xf32>,
    return
  }
  func.func @transform_0(%arg0: i32) -> (i32, i32) {
    %c0_i32 = arith.constant 0 : i32
    %c0_i32_0 = arith.constant 0 : i32
    return %arg0, %c0_i32 : i32, i32
  }
  func.func @transform_1(%arg0: i32) -> (i32, i32) {
    %c0_i32 = arith.constant 0 : i32
    %c0_i32_0 = arith.constant 0 : i32
    %c0_i32_1 = arith.constant 0 : i32
    return %c0_i32, %c0_i32_0 : i32, i32
  }
  func.func @transform_2(%arg0: i32) -> (i32, i32) {
    %c0_i32 = arith.constant 0 : i32
    %c0_i32_0 = arith.constant 0 : i32
    %c0_i32_1 = arith.constant 0 : i32
    return %c0_i32, %c0_i32_0 : i32, i32
  }
  func.func @transform_3(%arg0: i32) -> (i32, i32) {
    %c0_i32 = arith.constant 0 : i32
    %c0_i32_0 = arith.constant 0 : i32
    %c0_i32_1 = arith.constant 0 : i32
    return %c0_i32, %c0_i32_0 : i32, i32
  }
  func.func @transform_4(%arg0: i32) -> (i32, i32) {
    %c0_i32 = arith.constant 0 : i32
    %c0_i32_0 = arith.constant 0 : i32
    %c0_i32_1 = arith.constant 0 : i32
    return %c0_i32, %c0_i32_0 : i32, i32
  }
  func.func @transform_5(%arg0: i32) -> (i32, i32) {
    %c0_i32 = arith.constant 0 : i32
    %c0_i32_0 = arith.constant 0 : i32
    %c0_i32_1 = arith.constant 0 : i32
    return %c0_i32, %c0_i32_0 : i32, i32
  }
  func.func @transform_6(%arg0: i32) -> (i32, i32) {
    %c0_i32 = arith.constant 0 : i32
    %c0_i32_0 = arith.constant 0 : i32
    %c0_i32_1 = arith.constant 0 : i32
    return %c0_i32, %c0_i32_0 : i32, i32
  }
  func.func @transform_7(%arg0: i32) -> (i32, i32) {
    %c0_i32 = arith.constant 0 : i32
    %c0_i32_0 = arith.constant 0 : i32
    return %c0_i32, %arg0 : i32, i32
  }
}

</mosaic_0001>

<bundles_post_ra>
// kernel: tpu_custom_call.1
= control target key start
LH: loop header
LB: loop body
LE: loop exit
PB: predicated region body
PF: predicated region fallthrough
CT: control target
= control target key end

     0   :  { %s2246_s0 = inlined_call_operand.vmem [shape: f32[8,16], index: 0, kind: input, shape index: {}]   ;;  %s2247_s1 = inlined_call_operand.vmem [shape: f32[16,8], index: 1, kind: input, shape index: {}]   ;;  %s2248_s2 = inlined_call_operand.vmem [shape: f32[8,1], index: 2, kind: input, shape index: {}]   ;;  %s2249_s3 = inlined_call_operand.vmem [shape: f32[8,32], index: 3, kind: input, shape index: {}]   ;;  %s2250_s4 = inlined_call_operand.vmem [shape: f32[32,1], index: 4, kind: input, shape index: {}]   ;;  %s2251_s5 = inlined_call_operand.vmem [shape: f32[32,1], index: 5, kind: input, shape index: {}]   ;;  %s2252_s6 = inlined_call_operand.<no memory space> [shape: f32[1,1], index: 6, kind: input, shape index: {}]   ;;  %s2253_s7 = inlined_call_operand.hbm [shape: f32[1,8], index: 7, kind: output, shape index: {}]  }
   0x1   :  { %v12_v0 = vstv %s2252_s6 }
   0x2   :  { %13 = vst [vmem:[#allocation2] sm:$0x1] %v12_v0 }
   0x3   :  { %v30_v1 = vld [vmem:[%s2247_s1] sm:$0xff]  ;;  %vm70_vm0 = vcmask 130048   ;;  %v2073_v4 = vmov 0  }
   0x4   :  { %v32_v2 = vld [vmem:[%s2248_s2] sm:$0xff]  ;;  %38 = vxpose.xlu0.b32.start [1/2] (short) (narrow) %v30_v1, 8  ;;  %2043 = vset.pattern.permute.xlu1 %v2073_v4 }
   0x5   :  { %v29_v3 = vld [vmem:[%s2246_s0] sm:$0xff] }
   0x6   :  { %14 = vsyncpa [#allocation4], 0  ;;  %v31_v5 = vld [vmem:[%s2247_s1 + $0x8] sm:$0xff]  ;;  %v75_v6 = vsel %vm70_vm0, %v29_v3, 0  ;;  %35 = vperm.xlu1 %2043, %v32_v2   ;;  %v2074_v8 = vmov 0.0   ;;  %vm2075_vm1 = vmmov 0  }
   0x7   :  { %v78_v7 = vand.u32 4294901760, %v75_v6  ;;  %1813 = vmatprep.subr.mxu0 %v2074_v8  ;;  %1815 = vmatprep.mubr.msk.f32.mxu0 %vm2075_vm1, %v2074_v8  ;;  %v526_v9 = vld [vmem:[%s2249_s3] sm:$0xff]  ;;  %v528_v10 = vld [vmem:[%s2250_s4 + $0x8] sm:$0xff]  ;;  %vm583_vm2 = vcmask 64512   ;;  %v529_v32 = vld [vmem:[%s2250_s4 + $0x10] sm:$0xff]  ;;  %vm1229_vm4 = vcmask 261120  }
   0x8   :  { %39 = vxpose.xlu0.b32.end [2/2] (short) (narrow) %v31_v5, 8  ;;  %v527_v31 = vld [vmem:[%s2250_s4] sm:$0xff]  ;;  %v530_v33 = vld [vmem:[%s2250_s4 + $0x18] sm:$0xff]  ;;  %v1184_v35 = vld [vmem:[%s2251_s5 + $0x8] sm:$0xff]  ;;  %v2076_v5 = vmov 0.0|0.0   ;;  %s2077_s4 = smov [#allocation3]  }
   0x9   :  { %1814 = vmatpush3.xpose.msra.mxu0 %v78_v7  ;;  %v1187_v11 = vld [vmem:[#allocation2] sm:$0x1]  ;;  %v155_v12 = vsub.f32 %v75_v6, %v78_v7  ;;  %v1185_v36 = vld [vmem:[%s2251_s5 + $0x10] sm:$0xff]  ;;  %v1186_v37 = vld [vmem:[%s2251_s5 + $0x18] sm:$0xff]  ;;  %vm1724_vm9 = vcmask 57344  }
   0xa   :  { %1818 = vmatprep.subr.mxu0 %v2074_v8  ;;  %v1183_v34 = vld [vmem:[%s2251_s5] sm:$0xff]  ;;  %s1732_s5 = sshll.u32 %s2077_s4, 4  ;;  %s1733_s5 = int_to_ptr.vmem [resolvable:$true] %s1732_s5 }
   0xb   :  { %v156_v15 = vand.u32 4294901760, %v155_v12  ;;  %s2049_s24 = scalar_lea.vmem %s1733_s5, 16  ;;  %s2053_s25 = scalar_lea.vmem %s1733_s5, 32 }
   0xc   :  { %p2050_p0 = scmp.ne.s32.totalorder %s1733_s5, %s2049_s24  ;;  %p2054_p1 = scmp.lt.s32.totalorder %s1733_s5, %s1733_s5 }
   0xd   :  { %v157_v18 = vsub.f32 %v155_v12, %v156_v15  ;;  %p2055_p2 = scmp.lt.s32.totalorder %s2053_s25, %s2049_s24 }
   0xf   :  { %v158_v21 = vand.u32 4294901760, %v157_v18  ;;  %p2056_p3 = por %p2055_p2, %p2054_p1 }
  0x11   :  { %p2057_p4 = pnand %p2056_p3, %p2050_p0 }
  0x2f   :  { %551 = vxpose.xlu1.b32.start.end [1/1] (short) (narrow) %v526_v9, 32 }
  0x31   :  { %2044 = vset.pattern.permute.xlu0 %v2073_v4 }
  0x32   :  { %533 = vperm.xlu0 %2044, %v527_v31  }
  0x36   :  { %543 = vperm.xlu0 %2044, %v529_v32  }
  0x3a   :  { %548 = vperm.xlu0 %2044, %v530_v33  }
  0x58   :  { %1197 = vxpose.xlu0.b32.start [1/4] (short) (narrow) %v1183_v34, 8 }
  0x59   :  { %538 = vperm.xlu1 %2043, %v528_v10  }
  0x5c   :  { %1198 = vxpose.xlu0.b32.cont [2/4] (short) (narrow) %v1184_v35, 8 }
  0x5d   :  { %1190 = vperm.xlu1 %2043, %v1187_v11  }
  0x60   :  { %1199 = vxpose.xlu0.b32.cont [3/4] (short) (narrow) %v1185_v36, 8 }
  0x64   :  { %1200 = vxpose.xlu0.b32.end [4/4] (short) (narrow) %v1186_v37, 8 }
  0x84   :  { %v54_v13 = vpop.trf.xlu0 }
  0x85   :  { %v72_v14 = vsel %vm70_vm0, %v54_v13, 0  ;;  %v36_v23 = vpop.permute.xlu1 %35 }
  0x86   :  { %v143_v16 = vand.u32 4294901760, %v72_v14 }
  0x88   :  { %v144_v17 = vsub.f32 %v72_v14, %v143_v16 }
  0x8a   :  { %v145_v19 = vand.u32 4294901760, %v144_v17 }
  0x8c   :  { %v146_v20 = vsub.f32 %v144_v17, %v145_v19 }
  0x8e   :  { %v147_v22 = vand.u32 4294901760, %v146_v20 }
  0x90   :  { %1816 = vmatmul.mubr.f32.vlgmr.msra.gmra.mrb[0].mxu0 %v147_v22 }
  0x91   :  { %1819 = vmatpush3.xpose.msra.mxu0 %v158_v21  ;;  %1820 = vmatprep.mubr.msk.f32.mxu0 %vm2075_vm1, %v2074_v8 }
  0x92   :  { %1823 = vmatprep.subr.mxu0 %v2074_v8 }
  0x98   :  { %1821 = vmatmul.mubr.f32.vlgmr.msra.gmra.mrb[0].mxu0 %v143_v16 }
  0x99   :  { %1824 = vmatpush3.xpose.msra.mxu0 %v155_v12  ;;  %1825 = vmatprep.mubr.msk.f32.mxu0 %vm2075_vm1, %v2074_v8 }
  0x9a   :  { %1828 = vmatprep.subr.mxu0 %v2074_v8 }
  0xa0   :  { %1826 = vmatmul.mubr.f32.vlgmr.msra.gmra.mrb[0].mxu0 %v144_v17 }
  0xa1   :  { %1829 = vmatpush3.xpose.msra.mxu0 %v78_v7  ;;  %1830 = vmatprep.mubr.msk.f32.mxu0 %vm2075_vm1, %v2074_v8 }
  0xa2   :  { %1833 = vmatprep.subr.mxu0 %v2074_v8 }
  0xa8   :  { %1831 = vmatmul.mubr.f32.vlgmr.msra.gmra.mrb[0].mxu0 %v145_v19 }
  0xa9   :  { %1834 = vmatpush3.xpose.msra.mxu0 %v156_v15  ;;  %1835 = vmatprep.mubr.msk.f32.mxu0 %vm2075_vm1, %v2074_v8 }
  0xaa   :  { %1838 = vmatprep.subr.mxu0 %v2074_v8 }
  0xaf   :  { %v567_v24 = vpop.trf.xlu1 }
  0xb0   :  { %1836 = vmatmul.mubr.f32.vlgmr.msra.gmra.mrb[0].mxu0 %v143_v16  ;;  %v585_v25 = vsel %vm583_vm2, %v567_v24, 0 }
  0xb1   :  { %1839 = vmatpush3.xpose.msra.mxu0 %v78_v7  ;;  %1840 = vmatprep.mubr.msk.f32.mxu0 %vm2075_vm1, %v2074_v8  ;;  %v2162_v26 = vand.u32 4294901760, %v585_v25  ;;  %v534_v6 = vpop.permute.xlu0 %533 }
  0xb2   :  { %1969 = vmatprep.subr.bf16.mxu0 %v2076_v5 }
  0xb3   :  { %v2165_v27 = vsub.f32 %v585_v25, %v2162_v26  ;;  %v568_v38 = vpop.trf.xlu1 }
  0xb4   :  { %v588_v40 = vsel %vm583_vm2, %v568_v38, 0 }
  0xb5   :  { %v664_v28 = vand.u32 4294901760, %v2165_v27  ;;  %v672_v42 = vand.u32 4294901760, %v588_v40  ;;  %v544_v7 = vpop.permute.xlu0 %543 }
  0xb7   :  { %v665_v29 = vsub.f32 %v2165_v27, %v664_v28  ;;  %v569_v39 = vpop.trf.xlu1  ;;  %v673_v46 = vsub.f32 %v588_v40, %v672_v42 }
  0xb8   :  { %1841 = vmatmul.mubr.f32.vlgmr.msra.gmra.mrb[0].mxu0 %v143_v16  ;;  %v591_v41 = vsel %vm583_vm2, %v569_v39, 0 }
  0xb9   :  { %1921 = vmatprep.mubr.msk.f32.mxu0 %vm2075_vm1, %v2074_v8  ;;  %v666_v30 = vand.u32 4294901760, %v665_v29  ;;  %v682_v44 = vand.u32 4294901760, %v591_v41  ;;  %v674_v49 = vand.u32 4294901760, %v673_v46  ;;  %v549_v9 = vpop.permute.xlu0 %548 }
  0xbb   :  { %1845 = vmatprep.mubr.f32.mxu1 %v666_v30  ;;  %v570_v43 = vpop.trf.xlu1  ;;  %v683_v48 = vsub.f32 %v591_v41, %v682_v44  ;;  %v675_v57 = vsub.f32 %v673_v46, %v674_v49 }
  0xbc   :  { %v594_v45 = vsel %vm583_vm2, %v570_v43, 0 }
  0xbd   :  { %v692_v47 = vand.u32 4294901760, %v594_v45  ;;  %v684_v52 = vand.u32 4294901760, %v683_v48  ;;  %v676_v62 = vand.u32 4294901760, %v675_v57 }
  0xbf   :  { %v693_v50 = vsub.f32 %v594_v45, %v692_v47  ;;  %v685_v59 = vsub.f32 %v683_v48, %v684_v52 }
  0xc1   :  { %v694_v56 = vand.u32 4294901760, %v693_v50  ;;  %v686_v0 = vand.u32 4294901760, %v685_v59 }
  0xc3   :  { %v695_v63 = vsub.f32 %v693_v50, %v694_v56 }
  0xc5   :  { %v696_v2 = vand.u32 4294901760, %v695_v63 }
  0xd8   :  { %v1213_v10 = vpop.trf.xlu0  ;;  %v539_v13 = vpop.permute.xlu1 %538 }
  0xd9   :  { %v1231_v11 = vsel %vm1229_vm4, %v1213_v10, 0 }
  0xda   :  { %v2205_v12 = vand.u32 4294901760, %v1231_v11 }
  0xdc   :  { %v2208_v18 = vsub.f32 %v1231_v11, %v2205_v12 }
 0x18b   :  { %v519_v51 = vpop.f32.mrb[0].mxu0 }
 0x18c   :  { %v1993_v53 = vadd.f32 %v519_v51, %v36_v23  ;;  %v1842_v54 = vpop.f32.mrb[1].mxu0 }
 0x18e   :  { %vm523_vm3 = vcmp.ge.f32.partialorder %v1993_v53, 0.0  ;;  %v524_v55 = vmul.f32 0.01, %v1993_v53 }
 0x190   :  { %v525_v58 = vsel %vm523_vm3, %v1993_v53, %v524_v55 }
 0x191   :  { %v597_v60 = vand.u32 4294901760, %v525_v58 }
 0x193   :  { %v704_v61 = vsub.f32 %v525_v58, %v597_v60  ;;  %1843 = vmatprep.subr.mxu1 %v597_v60 }
 0x194   :  { %1844 = vmatpush3.msra.mxu1 %v597_v60 }
 0x195   :  { %1846 = vmatmul.mubr.f32.vlgmr.msra.gmra.mrb[0].mxu1 %v676_v62  ;;  %v705_v1 = vand.u32 4294901760, %v704_v61 }
 0x196   :  { %1848 = vmatprep.mubr.f32.mxu1 %v686_v0  ;;  %v1193_v0 = vlaneseq }
 0x197   :  { %v706_v3 = vsub.f32 %v704_v61, %v705_v1 }
 0x199   :  { %1849 = vmatmul.mubr.f32.gmra.mrb[2].mxu1 %v696_v2  ;;  %v707_v4 = vand.u32 4294901760, %v706_v3  ;;  %v1191_v3 = vpop.permute.xlu1 %1190 }
 0x19a   :  { %1853 = vmatprep.mubr.f32.mxu1 %v2162_v26 }
 0x19b   :  { %1851 = vmatprep.subr.mxu1 %v707_v4 }
 0x19c   :  { %1852 = vmatpush3.msra.mxu1 %v707_v4 }
 0x19d   :  { %1854 = vmatmul.mubr.f32.vlgmr.msra.gmra.mrb[0].mxu1 %v672_v42  ;;  %1859 = vmatprep.subr.mxu1 %v704_v61 }
 0x19e   :  { %1856 = vmatprep.mubr.f32.mxu1 %v682_v44  ;;  %1860 = vmatpush3.msra.mxu1 %v704_v61 }
 0x19f   :  { %1867 = vmatprep.subr.mxu1 %v597_v60 }
 0x1a1   :  { %1857 = vmatmul.mubr.f32.gmra.mrb[2].mxu1 %v692_v47 }
 0x1a2   :  { %1861 = vmatprep.mubr.f32.mxu1 %v2165_v27 }
 0x1a5   :  { %1862 = vmatmul.mubr.f32.vlgmr.msra.gmra.mrb[0].mxu1 %v673_v46 }
 0x1a6   :  { %1868 = vmatpush3.msra.mxu1 %v597_v60  ;;  %1864 = vmatprep.mubr.f32.mxu1 %v683_v48 }
 0x1a7   :  { %1875 = vmatprep.subr.mxu1 %v705_v1 }
 0x1a9   :  { %1865 = vmatmul.mubr.f32.gmra.mrb[2].mxu1 %v693_v50 }
 0x1aa   :  { %1869 = vmatprep.mubr.f32.mxu1 %v664_v28  ;;  %v1304_v28 = vand.u32 4294901760, %v2208_v18 }
 0x1ac   :  { %v1305_v39 = vsub.f32 %v2208_v18, %v1304_v28 }
 0x1ad   :  { %1870 = vmatmul.mubr.f32.vlgmr.msra.gmra.mrb[0].mxu1 %v674_v49 }
 0x1ae   :  { %1876 = vmatpush3.msra.mxu1 %v705_v1  ;;  %1872 = vmatprep.mubr.f32.mxu1 %v684_v52  ;;  %v1306_v50 = vand.u32 4294901760, %v1305_v39  ;;  %v1194_v1 = vshrl.u32 %v1193_v0, 7 }
 0x1af   :  { %1883 = vmatprep.subr.mxu1 %v597_v60 }
 0x1b0   :  { %v1195_v2 = vsub.s32 0, %v1194_v1 }
 0x1b1   :  { %1873 = vmatmul.mubr.f32.gmra.mrb[2].mxu1 %v694_v56 }
 0x1b2   :  { %1877 = vmatprep.mubr.f32.mxu1 %v2162_v26  ;;  %v1196_v4 = vrot.slane %v1191_v3, %v1195_v2 }
 0x1b5   :  { %1878 = vmatmul.mubr.f32.vlgmr.msra.gmra.mrb[0].mxu1 %v672_v42 }
 0x1b6   :  { %1884 = vmatpush3.msra.mxu1 %v597_v60  ;;  %1880 = vmatprep.mubr.f32.mxu1 %v682_v44 }
 0x1b7   :  { %1957 = vmatprep.subr.bf16.mxu1 %v2076_v5 }
 0x1b9   :  { %1881 = vmatmul.mubr.f32.gmra.mrb[2].mxu1 %v692_v47 }
 0x1ba   :  { %1885 = vmatprep.mubr.f32.mxu1 %v2162_v26 }
 0x1bd   :  { %1886 = vmatmul.mubr.f32.vlgmr.msra.gmra.mrb[0].mxu1 %v672_v42 }
 0x1be   :  { %1888 = vmatprep.mubr.f32.mxu1 %v682_v44 }
 0x1c1   :  { %1889 = vmatmul.mubr.f32.gmra.mrb[2].mxu1 %v692_v47 }
 0x1c2   :  { %1899 = vmatprep.mubr.msk.f32.mxu1 %vm2075_vm1, %v2074_v8 }
 0x290   :  { %v1887_v14 = vpop.f32.mrb[0].mxu1 }
 0x291   :  { %v1994_v15 = vadd.f32 %v1887_v14, %v539_v13  ;;  %v1149_v16 = vpop.f32.mrb[1].mxu1 }
 0x292   :  { %v1995_v17 = vadd.f32 %v1149_v16, %v534_v6 }
 0x293   :  { %vm1172_vm5 = vcmp.ge.f32.partialorder %v1994_v15, 0.0  ;;  %v1176_v19 = vmul.f32 0.01, %v1994_v15 }
 0x294   :  { %vm1171_vm6 = vcmp.ge.f32.partialorder %v1995_v17, 0.0  ;;  %v1175_v20 = vmul.f32 0.01, %v1995_v17  ;;  %v1890_v21 = vpop.f32.mrb[2].mxu1 }
 0x295   :  { %v1180_v22 = vsel %vm1172_vm5, %v1994_v15, %v1176_v19  ;;  %v1996_v23 = vadd.f32 %v1890_v21, %v549_v9  ;;  %v1161_v24 = vpop.f32.mrb[3].mxu1 }
 0x296   :  { %v1237_v25 = vand.u32 4294901760, %v1180_v22  ;;  %v1179_v26 = vsel %vm1171_vm6, %v1995_v17, %v1175_v20  ;;  %v1997_v27 = vadd.f32 %v1161_v24, %v544_v7 }
 0x297   :  { %v1234_v29 = vand.u32 4294901760, %v1179_v26  ;;  %vm1174_vm7 = vcmp.ge.f32.partialorder %v1996_v23, 0.0  ;;  %v1178_v30 = vmul.f32 0.01, %v1996_v23 }
 0x298   :  { %v1321_v31 = vsub.f32 %v1180_v22, %v1237_v25  ;;  %vm1173_vm8 = vcmp.ge.f32.partialorder %v1997_v27, 0.0  ;;  %v1177_v32 = vmul.f32 0.01, %v1997_v27 }
 0x299   :  { %v1314_v33 = vsub.f32 %v1179_v26, %v1234_v29  ;;  %v1182_v34 = vsel %vm1174_vm7, %v1996_v23, %v1178_v30  ;;  %v1958_v35 = vpack.c.bf16 %v1237_v25, %v1234_v29 }
 0x29a   :  { %v1322_v36 = vand.u32 4294901760, %v1321_v31  ;;  %v1243_v37 = vand.u32 4294901760, %v1182_v34  ;;  %v1181_v38 = vsel %vm1173_vm8, %v1997_v27, %v1177_v32 }
 0x29b   :  { %v1315_v40 = vand.u32 4294901760, %v1314_v33  ;;  %v1240_v41 = vand.u32 4294901760, %v1181_v38  ;;  %1959 = vmatpush3.bf16.msra.mxu1 %v1958_v35  ;;  %v1970_v42 = vpack.c.bf16 %v1321_v31, %v1314_v33 }
 0x29c   :  { %v1335_v43 = vsub.f32 %v1182_v34, %v1243_v37  ;;  %1960 = vmatprep.subr.bf16.mxu1 %v2076_v5  ;;  %v1323_v44 = vsub.f32 %v1321_v31, %v1322_v36 }
 0x29d   :  { %v1328_v45 = vsub.f32 %v1181_v38, %v1240_v41  ;;  %1971 = vmatpush3.bf16.msra.mxu0 %v1970_v42  ;;  %v1961_v46 = vpack.c.bf16 %v1243_v37, %v1240_v41  ;;  %v1316_v47 = vsub.f32 %v1314_v33, %v1315_v40  ;;  %v1982_v48 = vpack.c.bf16 %v1322_v36, %v1315_v40 }
 0x29e   :  { %v1336_v49 = vand.u32 4294901760, %v1335_v43  ;;  %1972 = vmatprep.subr.bf16.mxu0 %v2076_v5  ;;  %v1324_v51 = vand.u32 4294901760, %v1323_v44 }
 0x29f   :  { %v1329_v52 = vand.u32 4294901760, %v1328_v45  ;;  %1962 = vmatpush3.bf16.msra.mxu1 %v1961_v46  ;;  %v1973_v53 = vpack.c.bf16 %v1335_v43, %v1328_v45  ;;  %v1317_v54 = vand.u32 4294901760, %v1316_v47 }
 0x2a0   :  { %1963 = vmatprep.subr.bf16.mxu1 %v2076_v5  ;;  %v1337_v55 = vsub.f32 %v1335_v43, %v1336_v49 }
 0x2a1   :  { %1974 = vmatpush3.bf16.msra.mxu0 %v1973_v53  ;;  %v1964_v56 = vpack.c.bf16 %v1324_v51, %v1317_v54  ;;  %v1330_v57 = vsub.f32 %v1328_v45, %v1329_v52  ;;  %v1985_v58 = vpack.c.bf16 %v1336_v49, %v1329_v52 }
 0x2a2   :  { %1900 = vmatmul.mubr.f32.vlgmr.msra.gmra.mrb[4].mxu1 %v1306_v50  ;;  %1975 = vmatprep.subr.bf16.mxu0 %v2076_v5  ;;  %v1338_v59 = vand.u32 4294901760, %v1337_v55 }
 0x2a3   :  { %1965 = vmatpush3.bf16.msra.mxu1 %v1964_v56  ;;  %v1331_v60 = vand.u32 4294901760, %v1330_v57  ;;  %1910 = vmatprep.mubr.msk.f32.mxu1 %vm2075_vm1, %v2074_v8 }
 0x2a4   :  { %1922 = vmatmul.mubr.f32.vlgmr.msra.gmra.mrb[2].mxu0 %v2208_v18  ;;  %1966 = vmatprep.subr.bf16.mxu1 %v2076_v5 }
 0x2a5   :  { %1977 = vmatpush3.bf16.msra.mxu0 %v1958_v35  ;;  %v1967_v61 = vpack.c.bf16 %v1338_v59, %v1331_v60  ;;  %1932 = vmatprep.mubr.msk.f32.mxu0 %vm2075_vm1, %v2074_v8 }
 0x2a6   :  { %1978 = vmatprep.subr.bf16.mxu0 %v2076_v5 }
 0x2a7   :  { %1968 = vmatpush3.bf16.msra.mxu1 %v1967_v61 }
 0x2a9   :  { %1980 = vmatpush3.bf16.msra.mxu0 %v1961_v46 }
 0x2aa   :  { %1911 = vmatmul.mubr.f32.vlgmr.msra.gmra.mrb[4].mxu1 %v2205_v12  ;;  %1981 = vmatprep.subr.bf16.mxu0 %v2076_v5 }
 0x2ac   :  { %1933 = vmatmul.mubr.f32.vlgmr.msra.gmra.mrb[2].mxu0 %v1304_v28 }
 0x2ad   :  { %1983 = vmatpush3.bf16.msra.mxu0 %v1982_v48  ;;  %1943 = vmatprep.mubr.msk.f32.mxu0 %vm2075_vm1, %v2074_v8 }
 0x2ae   :  { %1984 = vmatprep.subr.bf16.mxu0 %v2076_v5 }
 0x2b1   :  { %1986 = vmatpush3.bf16.msra.mxu0 %v1985_v58 }
 0x2b2   :  { %1987 = vmatprep.subr.bf16.mxu0 %v2076_v5 }
 0x2b4   :  { %1944 = vmatmul.mubr.f32.vlgmr.msra.gmra.mrb[2].mxu0 %v2205_v12 }
 0x2b5   :  { %1989 = vmatpush3.bf16.msra.mxu0 %v1958_v35  ;;  %1954 = vmatprep.mubr.msk.f32.mxu0 %vm2075_vm1, %v2074_v8 }
 0x2b6   :  { %1990 = vmatprep.subr.bf16.mxu0 %v2076_v5 }
 0x2b9   :  { %1992 = vmatpush3.bf16.msra.mxu0 %v1961_v46 }
 0x2bc   :  { %1955 = vmatmul.mubr.f32.vlgmr.msra.gmra.mrb[2].mxu0 %v2205_v12 }
 0x37d   :  { %v1399_v62 = vpop.f32.mrb[4].mxu1 }
 0x37e   :  { %v1912_v63 = vpop.f32.mrb[5].mxu1  ;;  %v1998_v6 = vadd.f32 %v1399_v62, %v1196_v4 }
 0x38f   :  { %v1714_v7 = vpop.f32.mrb[2].mxu0 }
 0x390   :  { %v1999_v9 = vadd.f32 %v1998_v6, %v1714_v7  ;;  %v1956_v10 = vpop.f32.mrb[3].mxu0 }
 0x392   :  { %v1740_v11 = vmul.f32 -1.442695, %v1999_v9 }
 0x394   :  { %2045 = vpow2.f32 %v1740_v11 }
 0x39e   :  { %v2046_v13 = vpop.eup %2045 }
 0x39f   :  { %v1721_v8 = vadd.f32 1.0, %v2046_v13 }
 0x3a1   :  { %2047 = vrcp.f32 %v1721_v8 }
 0x3ab   :  { %v2048_v5 = vpop.eup %2047 }
 0x3ac   :  { %1725 = vst.msk [vmem:[#allocation3] sm:$0x1] %vm1724_vm9, %v2048_v5 }
 0x3ad   :  { %2060 = shalt.err (!%p2057_p4)
}
 0x3ae   :  { %s2061_s28 = scalar_lea.hbm %s2253_s7, 16 }
 0x3af   :  { %p2062_p5 = scmp.ne.s32.totalorder %s2253_s7, %s2061_s28  ;;  %p2065_p6 = scmp.lt.u32.totalorder %s2061_s28, %s2253_s7 }
 0x3b1   :  { %p2067_p7 = pnand %p2065_p6, %p2062_p5 }
 0x3b3   :  { %2070 = shalt.err (!%p2067_p7)
}
 0x3b4   :  { %1735 = dma.vmem_to_hbm [thread:$0]  %s1733_s5, 16, %s2253_s7, [#allocation4]  }
 0x3b5   :  { %2071 = dma.done.wait [#allocation4], 16  }
 0x3b6   :  { %2072 = vsyncadd [#allocation4], 4294967280 }
 0x3b7   :  { %1739 = vsyncpa [#allocation4], 1 }

</bundles_post_ra>
